<compile_context>
chip_gen: v7x
topology: tpu7x:2x2x1
jax: 0.10.0
libtpu: 0.0.40
codegen_flags: <defaults>
</compile_context>

<pallas_src>
import functools

import jax
import jax.numpy as jnp
from jax.experimental import pallas as pl
from jax.experimental.pallas import tpu as pltpu


# ----------------------------- Pallas kernel ------------------------------- #

def _hpf_conv_kernel(x_ref, w_ref, m_ref, o_ref, *, H, W, Cin, Cout, K, TH):
    """One (image, row-tile) step of the 5x5 SRM filter-bank conv.

    x_ref: (1, Cin, H + K - 1, W)  row-padded input plane (resident per image)
    w_ref: (Cout, K*K*Cin)         flattened filter bank, column order (kh, kw, c)
    m_ref: (K, TH*W)               per-kw lane masks (left/right zero padding)
    o_ref: (1, Cout, TH*W)         output row tile, spatial flattened into lanes
    """
    P = K // 2
    THp = TH + K - 1
    t = pl.program_id(1)
    r0 = t * TH
    if TH % 8 == 0:
        r0 = pl.multiple_of(r0, 8)

    # Row tile + 4-row halo (rows already zero-padded by the wrapper).
    xt = x_ref[0, :, pl.ds(r0, THp), :]                        # (Cin, THp, W)

    # Flatten rows into the lane axis ONCE, add a tiny P-lane zero guard so every tap
    # below is a plain in-bounds lane slice.
    xf = xt.reshape(Cin, THp * W)
    guard = jnp.zeros((Cin, P), dtype=xf.dtype)
    xf = jnp.concatenate([guard, xf, guard], axis=1)           # (Cin, THp*W + 2P)

    masks = m_ref[...]                                         # (K, TH*W)

    # im2col along the sublane/contraction axis: tap (kh, kw) is the contiguous TH*W
    # lane slice starting at kh*W + kw (vertical shift -> +kh*W lanes, horizontal
    # shift -> +kw lanes).  Row-boundary wraparound of the horizontal shift is exactly
    # the left/right zero padding, killed by the per-kw mask (kw == P needs no mask).
    taps = []
    for kh in range(K):
        for kw in range(K):
            s = kh * W + kw
            tap = xf[:, s:s + TH * W]                          # (Cin, TH*W)
            if kw != P:
                tap = tap * masks[kw]
            taps.append(tap)
    patches = jnp.concatenate(taps, axis=0)                    # (K*K*Cin, TH*W)

    # One MXU matmul; result lanes = spatial -> lane-dense store, NCHW directly.
    y = jnp.dot(w_ref[...], patches, preferred_element_type=jnp.float32)
    o_ref[0] = y.astype(o_ref.dtype)                           # (Cout, TH*W)


# ------------------------------- wrapper ------------------------------------ #

def _pick_row_tile(H, W, max_lanes=32 * 1024):
    """Largest divisor TH of H with TH*W a multiple of 128 and TH*W <= max_lanes
    (falls back to TH = H so the BlockSpec stays legal for awkward shapes)."""
    best = None
    for th in range(1, H + 1):
        if H % th:
            continue
        if th * W <= max_lanes and (th * W) % 128 == 0:
            best = th
    return best if best is not None else H


@functools.partial(jax.jit, static_argnames=("tile_h",))
def hpf_forward(x_nchw, w_oihw, tile_h=None):
    """Conv2d(3, 30, kernel_size=5, padding=2, bias=False) with the fixed HPF bank.

    NCHW in, NCHW out.  One fused pallas_call; no boundary transposes."""
    N, Cin, H, W = x_nchw.shape
    Cout, _, K, _ = w_oihw.shape
    P = K // 2

    TH = tile_h if tile_h is not None else _pick_row_tile(H, W)
    assert H % TH == 0, "row tile must divide H"
    n_tiles = H // TH

    x = x_nchw.astype(jnp.float32)
    xp = jnp.pad(x, ((0, 0), (0, 0), (P, P), (0, 0)))           # (N, Cin, H+4, W)

    # OIHW -> (co, kh, kw, c) -> (Cout, K*K*Cin); column order matches the kernel taps.
    w_flat = jnp.transpose(w_oihw, (0, 2, 3, 1)).reshape(Cout, K * K * Cin)
    w_flat = w_flat.astype(jnp.float32)

    # Per-kw lane masks implementing the left/right zero padding of the flattened rows.
    col = jnp.arange(TH * W, dtype=jnp.int32) % W               # column index per lane
    off = jnp.arange(K, dtype=jnp.int32) - P                    # (K,)
    shifted = col[None, :] + off[:, None]
    masks = ((shifted >= 0) & (shifted < W)).astype(jnp.float32)  # (K, TH*W)

    kernel = functools.partial(_hpf_conv_kernel, H=H, W=W, Cin=Cin, Cout=Cout,
                               K=K, TH=TH)

    cost = pl.CostEstimate(
        flops=2 * N * H * W * (K * K * Cin) * Cout,
        transcendentals=0,
        bytes_accessed=4 * (N * Cin * (H + 2 * P) * W
                            + Cout * K * K * Cin
                            + K * TH * W
                            + N * Cout * H * W),
    )

    out_flat = pl.pallas_call(
        kernel,
        out_shape=jax.ShapeDtypeStruct((N, Cout, H * W), jnp.float32),
        grid=(N, n_tiles),
        in_specs=[
            # Full padded plane, constant over the row-tile axis -> DMA'd once per image.
            pl.BlockSpec((1, Cin, H + 2 * P, W), lambda n, t: (n, 0, 0, 0)),
            pl.BlockSpec((Cout, K * K * Cin), lambda n, t: (0, 0)),
            pl.BlockSpec((K, TH * W), lambda n, t: (0, 0)),
        ],
        out_specs=pl.BlockSpec((1, Cout, TH * W), lambda n, t: (n, 0, t)),
        compiler_params=pltpu.CompilerParams(
            dimension_semantics=("parallel", "parallel")),
        cost_estimate=cost,
    )(xp, w_flat, masks)

    return out_flat.reshape(N, Cout, H, W)                      # metadata-only reshape


# ----------------------- fixed filter-bank construction ---------------------- #

def make_hpf_weight(key):
    """Deterministic stand-in for the SRM filter bank: 30 filters (mix of 3x3 padded
    to 5x5 and native 5x5), L1-normalized, replicated over 3 input channels (OIHW)."""
    keys = jax.random.split(key, 30)
    filts = []
    for i in range(30):
        if i % 2 == 0:                                           # mimic the 3x3 -> pad branch
            f3 = jax.random.normal(keys[i], (3, 3), jnp.float32)
            f3 = f3 / jnp.sum(jnp.abs(f3))
            f5 = jnp.pad(f3, ((1, 1), (1, 1)))
        else:
            f5 = jax.random.normal(keys[i], (5, 5), jnp.float32)
            f5 = f5 / jnp.sum(jnp.abs(f5))
        filts.append(f5)
    base = jnp.stack(filts, axis=0)                              # (30, 5, 5)
    # torch: .view(30,1,5,5).repeat(1,3,1,1) -> (30, 3, 5, 5), frozen
    return jnp.broadcast_to(base[:, None, :, :], (30, 3, 5, 5)).astype(jnp.float32)


# -------------------------------- reference ---------------------------------- #

def hpf_reference(x_nchw, w_oihw):
    return jax.lax.conv_general_dilated(
        x_nchw.astype(jnp.float32), w_oihw.astype(jnp.float32),
        window_strides=(1, 1), padding=[(2, 2), (2, 2)],
        dimension_numbers=("NCHW", "OIHW", "NCHW"),
        precision=jax.lax.Precision.HIGHEST)


# ---------------------------------- main ------------------------------------- #

if __name__ == "__main__":
    key = jax.random.PRNGKey(0)
    k_x, k_w = jax.random.split(key)

    N, Cin, H, W = 2, 3, 16, 16                    # module fixes Cin=3, Cout=30
    x = jax.random.normal(k_x, (N, Cin, H, W), jnp.float32)   # NCHW like PyTorch
    w = make_hpf_weight(k_w)                                   # (30, 3, 5, 5), frozen

    out = hpf_forward(x, w, tile_h=8)              # 2 row tiles per image -> grid (2, 2)
    out = jax.block_until_ready(out)

    ref = hpf_reference(x, w)
    assert out.shape == (N, 30, H, W)
    assert jnp.allclose(out, ref, atol=1e-3, rtol=1e-3), "mismatch vs JAX reference"

    print("KERNEL_OK")
</pallas_src>

<mosaic_0001>
module attributes {stable_mosaic.version = 11 : i64} {
  func.func @_hpf_conv_kernel(%arg0: i32, %arg1: i32, %arg2: memref<1x3x20x16xf32, #tpu.memory_space<vmem>>, %arg3: memref<30x75xf32, #tpu.memory_space<vmem>>, %arg4: memref<5x128xf32, #tpu.memory_space<vmem>>, %arg5: memref<1x30x128xf32, #tpu.memory_space<vmem>>) attributes {dimension_semantics = [#tpu.dimension_semantics<parallel>, #tpu.dimension_semantics<parallel>], iteration_bounds = array<i64: 2, 2>, scalar_prefetch = 0 : i64, scratch_operands = 0 : i64, tpu.core_type = #tpu.core_type<tc>, window_params = [{transform_indices = @transform_0, window_bounds = array<i64: 1, 3, 20, 16>}, {pipeline_mode = #tpu.pipeline_mode<synchronous>, transform_indices = @transform_1, window_bounds = array<i64: 30, 75>}, {pipeline_mode = #tpu.pipeline_mode<synchronous>, transform_indices = @transform_2, window_bounds = array<i64: 5, 128>}, {transform_indices = @transform_3, window_bounds = array<i64: 1, 30, 128>}]} {
    %c8_i32 = arith.constant 8 : i32
    %0 = arith.muli %arg1, %c8_i32 : i32
    %1 = tpu.assume_multiple %0, 8 : i32
    %c0 = arith.constant 0 : index
    %c0_0 = arith.constant 0 : index
    %2 = arith.index_cast %1 : i32 to index
    %c0_1 = arith.constant 0 : index
    %3 = vector.load %arg2[%c0, %c0_0, %2, %c0_1] : memref<1x3x20x16xf32, #tpu.memory_space<vmem>>, vector<1x3x12x16xf32>
    %4 = vector.shape_cast %3 : vector<1x3x12x16xf32> to vector<3x12x16xf32>
    %5 = vector.shape_cast %4 : vector<3x12x16xf32> to vector<3x192xf32>
    %cst = arith.constant 0.000000e+00 : f32
    %6 = vector.broadcast %cst : f32 to vector<3x2xf32>
    %7 = tpu.concatenate %6, %5, %6 in 1 : vector<3x2xf32>, vector<3x192xf32>, vector<3x2xf32> -> vector<3x196xf32>
    %c0_2 = arith.constant 0 : index
    %c0_3 = arith.constant 0 : index
    %8 = vector.load %arg4[%c0_2, %c0_3] : memref<5x128xf32, #tpu.memory_space<vmem>>, vector<5x128xf32>
    %9 = vector.extract_strided_slice %7 {offsets = [0, 0], sizes = [3, 128], strides = [1, 1]} : vector<3x196xf32> to vector<3x128xf32>
    %10 = vector.extract_strided_slice %8 {offsets = [0, 0], sizes = [1, 128], strides = [1, 1]} : vector<5x128xf32> to vector<1x128xf32>
    %11 = vector.shape_cast %10 : vector<1x128xf32> to vector<128xf32>
    %12 = vector.shape_cast %11 : vector<128xf32> to vector<1x128xf32>
    %13 = vector.broadcast %12 : vector<1x128xf32> to vector<3x128xf32>
    %14 = arith.mulf %9, %13 : vector<3x128xf32>
    %15 = vector.extract_strided_slice %7 {offsets = [0, 1], sizes = [3, 128], strides = [1, 1]} : vector<3x196xf32> to vector<3x128xf32>
    %16 = vector.extract_strided_slice %8 {offsets = [1, 0], sizes = [1, 128], strides = [1, 1]} : vector<5x128xf32> to vector<1x128xf32>
    %17 = vector.shape_cast %16 : vector<1x128xf32> to vector<128xf32>
    %18 = vector.shape_cast %17 : vector<128xf32> to vector<1x128xf32>
    %19 = vector.broadcast %18 : vector<1x128xf32> to vector<3x128xf32>
    %20 = arith.mulf %15, %19 : vector<3x128xf32>
    %21 = vector.extract_strided_slice %7 {offsets = [0, 2], sizes = [3, 128], strides = [1, 1]} : vector<3x196xf32> to vector<3x128xf32>
    %22 = vector.extract_strided_slice %7 {offsets = [0, 3], sizes = [3, 128], strides = [1, 1]} : vector<3x196xf32> to vector<3x128xf32>
    %23 = vector.extract_strided_slice %8 {offsets = [3, 0], sizes = [1, 128], strides = [1, 1]} : vector<5x128xf32> to vector<1x128xf32>
    %24 = vector.shape_cast %23 : vector<1x128xf32> to vector<128xf32>
    %25 = vector.shape_cast %24 : vector<128xf32> to vector<1x128xf32>
    %26 = vector.broadcast %25 : vector<1x128xf32> to vector<3x128xf32>
    %27 = arith.mulf %22, %26 : vector<3x128xf32>
    %28 = vector.extract_strided_slice %7 {offsets = [0, 4], sizes = [3, 128], strides = [1, 1]} : vector<3x196xf32> to vector<3x128xf32>
    %29 = vector.extract_strided_slice %8 {offsets = [4, 0], sizes = [1, 128], strides = [1, 1]} : vector<5x128xf32> to vector<1x128xf32>
    %30 = vector.shape_cast %29 : vector<1x128xf32> to vector<128xf32>
    %31 = vector.shape_cast %30 : vector<128xf32> to vector<1x128xf32>
    %32 = vector.broadcast %31 : vector<1x128xf32> to vector<3x128xf32>
    %33 = arith.mulf %28, %32 : vector<3x128xf32>
    %34 = vector.extract_strided_slice %7 {offsets = [0, 16], sizes = [3, 128], strides = [1, 1]} : vector<3x196xf32> to vector<3x128xf32>
    %35 = vector.extract_strided_slice %8 {offsets = [0, 0], sizes = [1, 128], strides = [1, 1]} : vector<5x128xf32> to vector<1x128xf32>
    %36 = vector.shape_cast %35 : vector<1x128xf32> to vector<128xf32>
    %37 = vector.shape_cast %36 : vector<128xf32> to vector<1x128xf32>
    %38 = vector.broadcast %37 : vector<1x128xf32> to vector<3x128xf32>
    %39 = arith.mulf %34, %38 : vector<3x128xf32>
    %40 = vector.extract_strided_slice %7 {offsets = [0, 17], sizes = [3, 128], strides = [1, 1]} : vector<3x196xf32> to vector<3x128xf32>
    %41 = vector.extract_strided_slice %8 {offsets = [1, 0], sizes = [1, 128], strides = [1, 1]} : vector<5x128xf32> to vector<1x128xf32>
    %42 = vector.shape_cast %41 : vector<1x128xf32> to vector<128xf32>
    %43 = vector.shape_cast %42 : vector<128xf32> to vector<1x128xf32>
    %44 = vector.broadcast %43 : vector<1x128xf32> to vector<3x128xf32>
    %45 = arith.mulf %40, %44 : vector<3x128xf32>
    %46 = vector.extract_strided_slice %7 {offsets = [0, 18], sizes = [3, 128], strides = [1, 1]} : vector<3x196xf32> to vector<3x128xf32>
    %47 = vector.extract_strided_slice %7 {offsets = [0, 19], sizes = [3, 128], strides = [1, 1]} : vector<3x196xf32> to vector<3x128xf32>
    %48 = vector.extract_strided_slice %8 {offsets = [3, 0], sizes = [1, 128], strides = [1, 1]} : vector<5x128xf32> to vector<1x128xf32>
    %49 = vector.shape_cast %48 : vector<1x128xf32> to vector<128xf32>
    %50 = vector.shape_cast %49 : vector<128xf32> to vector<1x128xf32>
    %51 = vector.broadcast %50 : vector<1x128xf32> to vector<3x128xf32>
    %52 = arith.mulf %47, %51 : vector<3x128xf32>
    %53 = vector.extract_strided_slice %7 {offsets = [0, 20], sizes = [3, 128], strides = [1, 1]} : vector<3x196xf32> to vector<3x128xf32>
    %54 = vector.extract_strided_slice %8 {offsets = [4, 0], sizes = [1, 128], strides = [1, 1]} : vector<5x128xf32> to vector<1x128xf32>
    %55 = vector.shape_cast %54 : vector<1x128xf32> to vector<128xf32>
    %56 = vector.shape_cast %55 : vector<128xf32> to vector<1x128xf32>
    %57 = vector.broadcast %56 : vector<1x128xf32> to vector<3x128xf32>
    %58 = arith.mulf %53, %57 : vector<3x128xf32>
    %59 = vector.extract_strided_slice %7 {offsets = [0, 32], sizes = [3, 128], strides = [1, 1]} : vector<3x196xf32> to vector<3x128xf32>
    %60 = vector.extract_strided_slice %8 {offsets = [0, 0], sizes = [1, 128], strides = [1, 1]} : vector<5x128xf32> to vector<1x128xf32>
    %61 = vector.shape_cast %60 : vector<1x128xf32> to vector<128xf32>
    %62 = vector.shape_cast %61 : vector<128xf32> to vector<1x128xf32>
    %63 = vector.broadcast %62 : vector<1x128xf32> to vector<3x128xf32>
    %64 = arith.mulf %59, %63 : vector<3x128xf32>
    %65 = vector.extract_strided_slice %7 {offsets = [0, 33], sizes = [3, 128], strides = [1, 1]} : vector<3x196xf32> to vector<3x128xf32>
    %66 = vector.extract_strided_slice %8 {offsets = [1, 0], sizes = [1, 128], strides = [1, 1]} : vector<5x128xf32> to vector<1x128xf32>
    %67 = vector.shape_cast %66 : vector<1x128xf32> to vector<128xf32>
    %68 = vector.shape_cast %67 : vector<128xf32> to vector<1x128xf32>
    %69 = vector.broadcast %68 : vector<1x128xf32> to vector<3x128xf32>
    %70 = arith.mulf %65, %69 : vector<3x128xf32>
    %71 = vector.extract_strided_slice %7 {offsets = [0, 34], sizes = [3, 128], strides = [1, 1]} : vector<3x196xf32> to vector<3x128xf32>
    %72 = vector.extract_strided_slice %7 {offsets = [0, 35], sizes = [3, 128], strides = [1, 1]} : vector<3x196xf32> to vector<3x128xf32>
    %73 = vector.extract_strided_slice %8 {offsets = [3, 0], sizes = [1, 128], strides = [1, 1]} : vector<5x128xf32> to vector<1x128xf32>
    %74 = vector.shape_cast %73 : vector<1x128xf32> to vector<128xf32>
    %75 = vector.shape_cast %74 : vector<128xf32> to vector<1x128xf32>
    %76 = vector.broadcast %75 : vector<1x128xf32> to vector<3x128xf32>
    %77 = arith.mulf %72, %76 : vector<3x128xf32>
    %78 = vector.extract_strided_slice %7 {offsets = [0, 36], sizes = [3, 128], strides = [1, 1]} : vector<3x196xf32> to vector<3x128xf32>
    %79 = vector.extract_strided_slice %8 {offsets = [4, 0], sizes = [1, 128], strides = [1, 1]} : vector<5x128xf32> to vector<1x128xf32>
    %80 = vector.shape_cast %79 : vector<1x128xf32> to vector<128xf32>
    %81 = vector.shape_cast %80 : vector<128xf32> to vector<1x128xf32>
    %82 = vector.broadcast %81 : vector<1x128xf32> to vector<3x128xf32>
    %83 = arith.mulf %78, %82 : vector<3x128xf32>
    %84 = vector.extract_strided_slice %7 {offsets = [0, 48], sizes = [3, 128], strides = [1, 1]} : vector<3x196xf32> to vector<3x128xf32>
    %85 = vector.extract_strided_slice %8 {offsets = [0, 0], sizes = [1, 128], strides = [1, 1]} : vector<5x128xf32> to vector<1x128xf32>
    %86 = vector.shape_cast %85 : vector<1x128xf32> to vector<128xf32>
    %87 = vector.shape_cast %86 : vector<128xf32> to vector<1x128xf32>
    %88 = vector.broadcast %87 : vector<1x128xf32> to vector<3x128xf32>
    %89 = arith.mulf %84, %88 : vector<3x128xf32>
    %90 = vector.extract_strided_slice %7 {offsets = [0, 49], sizes = [3, 128], strides = [1, 1]} : vector<3x196xf32> to vector<3x128xf32>
    %91 = vector.extract_strided_slice %8 {offsets = [1, 0], sizes = [1, 128], strides = [1, 1]} : vector<5x128xf32> to vector<1x128xf32>
    %92 = vector.shape_cast %91 : vector<1x128xf32> to vector<128xf32>
    %93 = vector.shape_cast %92 : vector<128xf32> to vector<1x128xf32>
    %94 = vector.broadcast %93 : vector<1x128xf32> to vector<3x128xf32>
    %95 = arith.mulf %90, %94 : vector<3x128xf32>
    %96 = vector.extract_strided_slice %7 {offsets = [0, 50], sizes = [3, 128], strides = [1, 1]} : vector<3x196xf32> to vector<3x128xf32>
    %97 = vector.extract_strided_slice %7 {offsets = [0, 51], sizes = [3, 128], strides = [1, 1]} : vector<3x196xf32> to vector<3x128xf32>
    %98 = vector.extract_strided_slice %8 {offsets = [3, 0], sizes = [1, 128], strides = [1, 1]} : vector<5x128xf32> to vector<1x128xf32>
    %99 = vector.shape_cast %98 : vector<1x128xf32> to vector<128xf32>
    %100 = vector.shape_cast %99 : vector<128xf32> to vector<1x128xf32>
    %101 = vector.broadcast %100 : vector<1x128xf32> to vector<3x128xf32>
    %102 = arith.mulf %97, %101 : vector<3x128xf32>
    %103 = vector.extract_strided_slice %7 {offsets = [0, 52], sizes = [3, 128], strides = [1, 1]} : vector<3x196xf32> to vector<3x128xf32>
    %104 = vector.extract_strided_slice %8 {offsets = [4, 0], sizes = [1, 128], strides = [1, 1]} : vector<5x128xf32> to vector<1x128xf32>
    %105 = vector.shape_cast %104 : vector<1x128xf32> to vector<128xf32>
    %106 = vector.shape_cast %105 : vector<128xf32> to vector<1x128xf32>
    %107 = vector.broadcast %106 : vector<1x128xf32> to vector<3x128xf32>
    %108 = arith.mulf %103, %107 : vector<3x128xf32>
    %109 = vector.extract_strided_slice %7 {offsets = [0, 64], sizes = [3, 128], strides = [1, 1]} : vector<3x196xf32> to vector<3x128xf32>
    %110 = vector.extract_strided_slice %8 {offsets = [0, 0], sizes = [1, 128], strides = [1, 1]} : vector<5x128xf32> to vector<1x128xf32>
    %111 = vector.shape_cast %110 : vector<1x128xf32> to vector<128xf32>
    %112 = vector.shape_cast %111 : vector<128xf32> to vector<1x128xf32>
    %113 = vector.broadcast %112 : vector<1x128xf32> to vector<3x128xf32>
    %114 = arith.mulf %109, %113 : vector<3x128xf32>
    %115 = vector.extract_strided_slice %7 {offsets = [0, 65], sizes = [3, 128], strides = [1, 1]} : vector<3x196xf32> to vector<3x128xf32>
    %116 = vector.extract_strided_slice %8 {offsets = [1, 0], sizes = [1, 128], strides = [1, 1]} : vector<5x128xf32> to vector<1x128xf32>
    %117 = vector.shape_cast %116 : vector<1x128xf32> to vector<128xf32>
    %118 = vector.shape_cast %117 : vector<128xf32> to vector<1x128xf32>
    %119 = vector.broadcast %118 : vector<1x128xf32> to vector<3x128xf32>
    %120 = arith.mulf %115, %119 : vector<3x128xf32>
    %121 = vector.extract_strided_slice %7 {offsets = [0, 66], sizes = [3, 128], strides = [1, 1]} : vector<3x196xf32> to vector<3x128xf32>
    %122 = vector.extract_strided_slice %7 {offsets = [0, 67], sizes = [3, 128], strides = [1, 1]} : vector<3x196xf32> to vector<3x128xf32>
    %123 = vector.extract_strided_slice %8 {offsets = [3, 0], sizes = [1, 128], strides = [1, 1]} : vector<5x128xf32> to vector<1x128xf32>
    %124 = vector.shape_cast %123 : vector<1x128xf32> to vector<128xf32>
    %125 = vector.shape_cast %124 : vector<128xf32> to vector<1x128xf32>
    %126 = vector.broadcast %125 : vector<1x128xf32> to vector<3x128xf32>
    %127 = arith.mulf %122, %126 : vector<3x128xf32>
    %128 = vector.extract_strided_slice %7 {offsets = [0, 68], sizes = [3, 128], strides = [1, 1]} : vector<3x196xf32> to vector<3x128xf32>
    %129 = vector.extract_strided_slice %8 {offsets = [4, 0], sizes = [1, 128], strides = [1, 1]} : vector<5x128xf32> to vector<1x128xf32>
    %130 = vector.shape_cast %129 : vector<1x128xf32> to vector<128xf32>
    %131 = vector.shape_cast %130 : vector<128xf32> to vector<1x128xf32>
    %132 = vector.broadcast %131 : vector<1x128xf32> to vector<3x128xf32>
    %133 = arith.mulf %128, %132 : vector<3x128xf32>
    %134 = tpu.concatenate %14, %20, %21, %27, %33, %39, %45, %46, %52, %58, %64, %70, %71, %77, %83, %89 in 0 : vector<3x128xf32>, vector<3x128xf32>, vector<3x128xf32>, vector<3x128xf32>, vector<3x128xf32>, vector<3x128xf32>, vector<3x128xf32>, vector<3x128xf32>, vector<3x128xf32>, vector<3x128xf32>, vector<3x128xf32>, vector<3x128xf32>, vector<3x128xf32>, vector<3x128xf32>, vector<3x128xf32>, vector<3x128xf32> -> vector<48x128xf32>
    %135 = tpu.concatenate %95, %96, %102, %108, %114, %120, %121, %127, %133 in 0 : vector<3x128xf32>, vector<3x128xf32>, vector<3x128xf32>, vector<3x128xf32>, vector<3x128xf32>, vector<3x128xf32>, vector<3x128xf32>, vector<3x128xf32>, vector<3x128xf32> -> vector<27x128xf32>
    %136 = tpu.concatenate %134, %135 in 0 : vector<48x128xf32>, vector<27x128xf32> -> vector<75x128xf32>
    %c0_4 = arith.constant 0 : index
    %c0_5 = arith.constant 0 : index
    %137 = vector.load %arg3[%c0_4, %c0_5] : memref<30x75xf32, #tpu.memory_space<vmem>>, vector<30x75xf32>
    %cst_6 = arith.constant dense<0.000000e+00> : vector<30x128xf32>
    %138 = tpu.matmul %137, %136, %cst_6 {dimension_numbers = #tpu.dot_dimension_numbers<[1], [0], [0], [1], [0, 0, 1, 1], [], []>} : vector<30x75xf32>, vector<75x128xf32>, vector<30x128xf32> -> vector<30x128xf32>
    %c0_7 = arith.constant 0 : index
    %c0_8 = arith.constant 0 : index
    %c0_9 = arith.constant 0 : index
    %139 = vector.load %arg5[%c0_7, %c0_8, %c0_9] : memref<1x30x128xf32, #tpu.memory_space<vmem>>, vector<1x30x128xf32>
    %140 = vector.shape_cast %139 : vector<1x30x128xf32> to vector<30x128xf32>
    %141 = vector.shape_cast %138 : vector<30x128xf32> to vector<1x30x128xf32>
    tpu.vector_store %arg5[%c0_7, %c0_8, %c0_9], %141 {strides = array<i32>} : memref<1x30x128xf32, #tpu.memory_space<vmem>>, vector<1x30x128xf32>,
    return
  }
  func.func @transform_0(%arg0: i32, %arg1: i32) -> (i32, i32, i32, i32) {
    %c0_i32 = arith.constant 0 : i32
    %c0_i32_0 = arith.constant 0 : i32
    %c0_i32_1 = arith.constant 0 : i32
    %c0_i32_2 = arith.constant 0 : i32
    return %arg0, %c0_i32, %c0_i32_0, %c0_i32_1 : i32, i32, i32, i32
  }
  func.func @transform_1(%arg0: i32, %arg1: i32) -> (i32, i32) {
    %c0_i32 = arith.constant 0 : i32
    %c0_i32_0 = arith.constant 0 : i32
    %c0_i32_1 = arith.constant 0 : i32
    return %c0_i32, %c0_i32_0 : i32, i32
  }
  func.func @transform_2(%arg0: i32, %arg1: i32) -> (i32, i32) {
    %c0_i32 = arith.constant 0 : i32
    %c0_i32_0 = arith.constant 0 : i32
    %c0_i32_1 = arith.constant 0 : i32
    return %c0_i32, %c0_i32_0 : i32, i32
  }
  func.func @transform_3(%arg0: i32, %arg1: i32) -> (i32, i32, i32) {
    %c0_i32 = arith.constant 0 : i32
    %c0_i32_0 = arith.constant 0 : i32
    return %arg0, %c0_i32, %arg1 : i32, i32, i32
  }
}

</mosaic_0001>

<bundles_post_ra>
// kernel: hpf_forward.1
= control target key start
LH: loop header
LB: loop body
LE: loop exit
PB: predicated region body
PF: predicated region fallthrough
CT: control target
= control target key end

     0   :  { %s1450_s12 = smov 0   ;;  %s1452_s13 = smov 0   ;;  %s1734_s0 = inlined_call_operand.vmem [shape: f32[2,3,20,16], index: 0, kind: input, shape index: {}]   ;;  %s1735_s1 = inlined_call_operand.vmem [shape: f32[30,75], index: 1, kind: input, shape index: {}]   ;;  %s1736_s2 = inlined_call_operand.vmem [shape: f32[5,128], index: 2, kind: input, shape index: {}]   ;;  %s1737_s3 = inlined_call_operand.vmem [shape: f32[2,30,256], index: 3, kind: output, shape index: {}]  }
   0x1   :  { %s1454_s14 = smov 0   ;;  %s1456_s15 = smov 0  }
   0x2   :  { %s1458_s16 = smov 0   ;;  %s1460_s17 = smov 0  }
   0x3   :  { %s1462_s18 = smov 0  }
   0x4 LB: > { %s22_s19 = sadd.s32 1, %s1379_s16  ;;  %s25_s20 = sadd.s32 1, %s1383_s17  ;;  %s1387_s18 = sphi %s1462_s18, %s13_s18   ;;  %s1383_s17 = sphi %s1460_s17, %s1752_s17   ;;  %s1379_s16 = sphi %s1458_s16, %s1751_s16   ;;  %s1375_s15 = sphi %s1456_s15, %s1750_s15   ;;  %s1371_s14 = sphi %s1454_s14, %s1749_s14   ;;  %s1367_s13 = sphi %s1452_s13, %s1748_s13   ;;  %s1363_s12 = sphi %s1450_s12, %s1747_s12  }
   0x5   : > { %p23_p0 = scmp.ge.s32.totalorder %s22_s19, 2  ;;  %s1005_s21 = sadd.s32 4294967295, %s1387_s18  }
   0x6   : > { %p112_p1 = scmp.ne.s32.totalorder %s1367_s13, %s1363_s12  ;;  %p113_p2 = scmp.eq.s32.totalorder %s1005_s21, 3 }
   0x7   : > { %s1754_s19 = smov (%p23_p0, %s22_s19), 0  ;;  %s1756_s20 = smov (!%p23_p0, %s25_s20), %s1383_s17 }
   0x8   : > { %s98_s22 = ssub.s32 %s1379_s16, %s1754_s19  ;;  %p27_p3 = scmp.ge.s32.totalorder %s1756_s20, 2 }
   0x9   : > { %p1009_p4 = scmp.ge.s32.totalorder %s1387_s18, 1  ;;  %p1496_p5 = por %p113_p2, %p112_p1 }
   0xa   : > { %p151_p6 = scmp.lt.s32.totalorder %s1387_s18, 5  ;;  %s1758_s20 = smov (%p27_p3, %s1756_s20), 0 }
   0xb   : > { %s97_s24 = ssub.s32 %s1383_s17, %s1758_s20  ;;  %s102_s26 = sadd.s32 1, %s1367_s13 }
   0xc   : > { %p152_p7 = pnand %p1009_p4, %p151_p6  ;;  %s99_s25 = sor.u32 %s98_s22, %s97_s24 }
   0xd   : > { %p100_p8 = scmp.eq.s32.totalorder %s99_s25, 0  ;;  %p174_p9 = scmp.lt.s32.totalorder (!%p152_p7), %s1375_s15, 1  ;;  %v191_v0 = vlaneseq (!%p152_p7)  ;;  %v1389_v1 = vmov (!%p152_p7), 1983009808   ;;  %v1390_v5 = vmov (!%p152_p7), 1934713408  }
   0xe   : > { %155 = sbr.rel (%p152_p7) target bundleno = 769 (0x301), region = 32  ;;  %v189_v2 = vunpack.c.l.s4 (!%p152_p7), %v1389_v1  ;;  %v220_v6 = vunpack.c.l.s4 (!%p152_p7), %v1390_v5  ;;  %s1012_s30 = sshll.u32 (!%p152_p7), %s1371_s14, 3  ;;  %v1391_v11 = vmov (!%p152_p7), 0.0   ;;  %v357_v38 = vld [vmem:[%s1736_s2] sm:$0x1f] (!%p152_p7)  ;;  %vm327_vm0 = vcmask (!%p152_p7), 130048  }
   0xf   : > { %s1507_s27 = scalar_select %p100_p8, %s1367_s13, %s102_s26  }
  0x10   : > { %v1511_v3 = vshrl.u32 (!%p152_p7), %v191_v0, 7  ;;  %v190_v4 = vunpack.c.0.s8 (!%p152_p7), %v189_v2  ;;  %v221_v8 = vunpack.c.0.s8 (!%p152_p7), %v220_v6  ;;  %s1392_s8 = smov (!%p152_p7), 64   ;;  %s1393_s9 = smov (!%p152_p7), 32   ;;  %vm329_vm1 = vcmask (!%p152_p7), 261120  }
  0x11   : > { %s1394_s10 = smov (!%p152_p7), 96   ;;  %s1395_s22 = smov (!%p152_p7), 48   ;;  %vm331_vm2 = vcmask (!%p152_p7), 392192   ;;  %vm333_vm3 = vcmask (!%p152_p7), 523264   ;;  %vm1738_vm4 = vcmask (!%p152_p7), 654336   ;;  %vm337_vm5 = vcmask (!%p152_p7), 785408  }
  0x12   : > { %v193_v7 = vsub.s32 (!%p152_p7), %v190_v4, %v1511_v3  ;;  %v224_v18 = vsub.s32 (!%p152_p7), %v221_v8, %v1511_v3  ;;  %v365_v36 = vsub.s32 (!%p152_p7), 1, %v1511_v3  ;;  %v360_v37 = vsub.s32 (!%p152_p7), 0, %v1511_v3  ;;  %s1396_s24 = smov (!%p152_p7), 16   ;;  %s1397_s25 = smov (!%p152_p7), 80  }
  0x13   : > { %v385_v45 = vsub.s32 (!%p152_p7), 4, %v1511_v3  ;;  %v375_v46 = vsub.s32 (!%p152_p7), 3, %v1511_v3  ;;  %s1398_s26 = smov (!%p152_p7), 112   ;;  %vm339_vm6 = vcmask (!%p152_p7), 916480   ;;  %s1402_s4 = smov (!%p152_p7), 65   ;;  %vm350_vm7 = vcmask (!%p152_p7), 15360  }
  0x14   : > { %v1528_v39 = vrot.slane (!%p152_p7), %v357_v38, %v365_v36  ;;  %v1530_v40 = vrot.slane (!%p152_p7), %v357_v38, %v360_v37  ;;  %s1403_s5 = smov (!%p152_p7), 68   ;;  %s1406_s11 = smov (!%p152_p7), 3   ;;  %vm355_vm8 = vcmask (!%p152_p7), 539648   ;;  %vm482_vm9 = vcmask (!%p152_p7), 1039360  }
  0x15   : > { %s175_s28 = scalar_select %p174_p9, %s1375_s15, 1  ;;  %v386_v47 = vrot.slane %v357_v38, %v385_v45  ;;  %v376_v48 = vrot.slane %v357_v38, %v375_v46  ;;  %vm630_vm10 = vcmask 1042432   ;;  %vm504_vm11 = vcmask 1022976  }
  0x16   : > { %s1407_s21 = smov 4   ;;  %vm493_vm12 = vcmask 1031168   ;;  %vm634_vm13 = vcmask 1040384   ;;  %vm636_vm14 = vcmask 1043456   ;;  %vm632_vm15 = vcmask 1045504  }
  0x17   : > { %s1096_s29 = smul.u32 72, %s175_s28  ;;  %s1399_s28 = smov 52  }
  0x19   : > { %s178_s6 = scalar_lea.vmem %s1734_s0, %s1096_s29  ;;  %s1400_s29 = smov 51  }
  0x1a   : > { %s180_s7 = scalar_lea.vmem %s178_s6, %s1012_s30  ;;  %s1401_s30 = smov 2  }
  0x1b   : > { %v183_v9 = vld [vmem:[%s180_s7 + $0x18] sm:$0xff]  ;;  %v1329_v10 = vld [vmem:[%s180_s7 + $0x4] ss:$48 sps:$4 sm:$0xff]   ;;  %v1331_v13 = vld [vmem:[%s180_s7] ss:$48 sps:$4 sm:$0xff]   ;;  %s1404_s6 = smov 67  }
  0x1c   : > { %v202_v12 = vcombine.high %v183_v9, %v1391_v11  ;;  %v209_v14 = vrot.slane %v183_v9, %v193_v7  ;;  %v1332_v15 = vld [vmem:[%s180_s7 + $0x8] ss:$48 sps:$4 sm:$0xff]   ;;  %v201_v16 = vrot.slane %v1329_v10, %v193_v7  ;;  %v194_v19 = vrot.slane %v1331_v13, %v193_v7  ;;  %v1013_v20 = vld.sshfl [vmem:[%s180_s7 + $0x20] sm:$0x33 pattern:$0x76325410] }
  0x1d   : > { %v260_v21 = vrot.slane %v1332_v15, %v193_v7  ;;  %s1405_s7 = smov 1  }
  0x1e   : > { %v216_v17 = vrot.slane %v202_v12, %v193_v7  ;;  %v218_v23 = vcombine.high %v194_v19, %v209_v14  ;;  %v217_v24 = vcombine.low %v194_v19, %v209_v14 }
  0x1f   : > { %v270_v26 = vcombine.high %v260_v21, %v1013_v20  ;;  %v269_v29 = vcombine.low %v260_v21, %v1013_v20 }
  0x20   : > { %v233_v22 = vcombine.low %v201_v16, %v216_v17  ;;  %v234_v25 = vcombine.high %v201_v16, %v216_v17  ;;  %v232_v28 = vrot.slane %v218_v23, %v224_v18  ;;  %v225_v32 = vrot.slane %v217_v24, %v224_v18 }
  0x21   : > { %v284_v30 = vrot.slane %v270_v26, %v224_v18  ;;  %v277_v33 = vrot.slane %v269_v29, %v224_v18 }
  0x22   : > { %v241_v27 = vrot.slane %v233_v22, %v224_v18  ;;  %292 = vrot.lane.b32.xlu0 %v232_v28, %s1393_s9  ;;  %v248_v31 = vrot.slane %v234_v25, %v224_v18  ;;  %v250_v34 = vcombine.high %v232_v28, %v1391_v11  ;;  %v249_v35 = vcombine.high %v225_v32, %v1391_v11 }
  0x23   : > { %v285_v42 = vcombine.high %v277_v33, %v1391_v11  ;;  %v286_v43 = vcombine.high %v284_v30, %v1391_v11 }
  0x24   : > { %300 = vrot.lane.b32.xlu1 %v241_v27, %s1392_s8  ;;  %v251_v41 = vcombine.high %v241_v27, %v1391_v11  ;;  %v252_v44 = vcombine.high %v248_v31, %v1391_v11 }
  0x26   : > { %308 = vrot.lane.b32.xlu0 %v248_v31, %s1394_s10 }
  0x28   : > { %320 = vrot.lane.b32.xlu1 %v284_v30, %s1393_s9 }
  0x2a   : > { %288 = vrot.lane.b32.xlu0 %v249_v35, %s1396_s24 }
  0x2c   : > { %296 = vrot.lane.b32.xlu1 %v250_v34, %s1395_s22 }
  0x2e   : > { %304 = vrot.lane.b32.xlu0 %v251_v41, %s1397_s25 }
  0x30   : > { %316 = vrot.lane.b32.xlu1 %v285_v42, %s1396_s24 }
  0x32   : > { %312 = vrot.lane.b32.xlu0 %v252_v44, %s1398_s26 }
  0x34   : > { %324 = vrot.lane.b32.xlu1 %v286_v43, %s1395_s22 }
  0x36   : > { %444 = vrot.lane.b32.xlu0 %v376_v48, %s1400_s29  ;;  %s1409_s29 = smov 17  }
  0x38   : > { %449 = vrot.lane.b32.xlu1 %v386_v47, %s1399_s28  ;;  %s1408_s28 = smov 20  }
  0x94   : > { %v293_v50 = vpop.permute.xlu0 %292 }
  0x96   : > { %v301_v49 = vpop.permute.xlu1 %300 }
  0x98   : > { %v309_v52 = vpop.permute.xlu0 %308 }
  0x9a   : > { %v321_v51 = vpop.permute.xlu1 %320 }
  0x9c   : > { %v289_v54 = vpop.permute.xlu0 %288 }
  0x9d   : > { %v328_v55 = vsel %vm327_vm0, %v225_v32, %v289_v54 }
  0x9e   : > { %v297_v53 = vpop.permute.xlu1 %296  ;;  %v330_v56 = vsel %vm329_vm1, %v328_v55, %v293_v50 }
  0x9f   : > { %v332_v57 = vsel %vm331_vm2, %v330_v56, %v297_v53 }
  0xa0   : > { %v334_v59 = vsel %vm333_vm3, %v332_v57, %v301_v49  ;;  %v305_v60 = vpop.permute.xlu0 %304  ;;  %vm640_vm3 = vcmask 1041408  }
  0xa1   : > { %v336_v62 = vsel %vm1738_vm4, %v334_v59, %v305_v60  ;;  %vm1739_vm4 = vcmask 613376  }
  0xa2   : > { %v317_v58 = vpop.permute.xlu1 %316  ;;  %v338_v2 = vsel %vm337_vm5, %v336_v62, %v309_v52 }
  0xa3   : > { %v341_v61 = vsel %vm327_vm0, %v277_v33, %v317_v58  ;;  %vm690_vm0 = vcmask 924672  }
  0xa4   : > { %v313_v0 = vpop.permute.xlu0 %312  ;;  %v342_v1 = vsel %vm329_vm1, %v341_v61, %v321_v51  ;;  %vm638_vm1 = vcmask 1046528  }
  0xa5   : > { %v340_v4 = vsel %vm339_vm6, %v338_v2, %v313_v0 }
  0xa6   : > { %v325_v63 = vpop.permute.xlu1 %324  ;;  %346 = vrot.lane.b32.xlu0 %v340_v4, %s1401_s30 }
  0xa7   : > { %v343_v3 = vsel %vm331_vm2, %v342_v1, %v325_v63  ;;  %vm536_vm2 = vcmask 908288  }
  0xa8   : > { %348 = vrot.lane.b32.xlu1 %v343_v3, %s1401_s30  ;;  %s1411_s30 = smov 35   ;;  %v445_v6 = vpop.permute.xlu0 %444 }
  0xaa   : > { %454 = vrot.lane.b32.xlu0 %v1530_v40, %s1392_s8  ;;  %s1410_s8 = smov 19   ;;  %v450_v5 = vpop.permute.xlu1 %449 }
  0xac   : > { %459 = vrot.lane.b32.xlu1 %v1528_v39, %s1402_s4  ;;  %s1412_s4 = smov 33  }
  0xae   : > { %464 = vrot.lane.b32.xlu0 %v376_v48, %s1404_s6  ;;  %s1417_s6 = smov 126  }
  0xb0   : > { %469 = vrot.lane.b32.xlu1 %v386_v47, %s1403_s5  ;;  %s1414_s5 = smov 49  }
  0xb2   : > { %378 = vrot.lane.b32.xlu0 %v376_v48, %s1406_s11  ;;  %s1419_s11 = smov 111  }
  0xb4   : > { %368 = vrot.lane.b32.xlu1 %v1528_v39, %s1405_s7  ;;  %s1418_s7 = smov 113  }
  0xb6   : > { %388 = vrot.lane.b32.xlu0 %v386_v47, %s1407_s21  ;;  %s1420_s21 = smov 110  }
  0xb8   : > { %394 = vrot.lane.b32.xlu1 %v1530_v40, %s1396_s24  ;;  %s1413_s24 = smov 36  }
  0xba   : > { %399 = vrot.lane.b32.xlu0 %v1528_v39, %s1409_s29  ;;  %s1422_s29 = smov 94  }
  0xbc   : > { %409 = vrot.lane.b32.xlu1 %v386_v47, %s1408_s28  ;;  %s1421_s28 = smov 109  }
  0xbe   : > { %414 = vrot.lane.b32.xlu0 %v1530_v40, %s1393_s9  ;;  %s1415_s9 = smov 127  }
  0xc0   : > { %404 = vrot.lane.b32.xlu1 %v376_v48, %s1410_s8  ;;  %s1423_s8 = smov 124  }
  0xc2   : > { %419 = vrot.lane.b32.xlu0 %v1528_v39, %s1412_s4  ;;  %s1425_s4 = smov 95  }
  0xc4   : > { %424 = vrot.lane.b32.xlu1 %v376_v48, %s1411_s30  ;;  %s1424_s30 = smov 108  }
  0xc6   : > { %429 = vrot.lane.b32.xlu0 %v386_v47, %s1413_s24  ;;  %s1427_s24 = smov 92  }
  0xc8   : > { %434 = vrot.lane.b32.xlu1 %v1530_v40, %s1395_s22  ;;  %s1416_s22 = smov 125  }
  0xca   : > { %439 = vrot.lane.b32.xlu0 %v1528_v39, %s1414_s5 }
 0x118   : > { %v347_v8 = vpop.permute.xlu0 %346 }
 0x119   : > { %v1560_v10 = vsel %vm350_vm7, 0.0, %v347_v8 }
 0x11a   : > { %v349_v7 = vpop.permute.xlu1 %348  ;;  %v452_v12 = vmul.f32 %v450_v5, %v1560_v10  ;;  %v651_v18 = vrot.slane %v1560_v10, 5  ;;  %v447_v19 = vmul.f32 %v445_v6, %v1560_v10  ;;  %v705_v47 = vrot.slane %v1560_v10, 6 }
 0x11b   : > { %v351_v9 = vsel %vm350_vm7, %v347_v8, %v349_v7  ;;  %v487_v60 = vrot.slane %v1560_v10, 2  ;;  %v589_v63 = vrot.slane %v1560_v10, 4  ;;  %vm545_vm7 = vcmask 900096  }
 0x11c   : > { %v1562_v11 = vsel %vm355_vm8, %v351_v9, 0.0  ;;  %v455_v17 = vpop.permute.xlu0 %454  ;;  %v673_v23 = vrot.slane %v452_v12, 7  ;;  %v662_v33 = vrot.slane %v447_v19, 2  ;;  %vm1740_vm8 = vcmask 1044480  }
 0x11d   : > { %v652_v13 = vrot.slane %v1562_v11, 5  ;;  %v453_v14 = vmul.f32 %v450_v5, %v1562_v11  ;;  %v448_v15 = vmul.f32 %v445_v6, %v1562_v11  ;;  %v457_v21 = vmul.f32 %v455_v17, %v1560_v10 }
 0x11e   : > { %v460_v16 = vpop.permute.xlu1 %459  ;;  %v458_v22 = vmul.f32 %v455_v17, %v1562_v11  ;;  %v706_v43 = vrot.slane %v1562_v11, 6  ;;  %v488_v54 = vrot.slane %v1562_v11, 2  ;;  %v590_v61 = vrot.slane %v1562_v11, 4 }
 0x11f   : > { %v462_v20 = vmul.f32 %v460_v16, %v1560_v10  ;;  %v463_v24 = vmul.f32 %v460_v16, %v1562_v11  ;;  %v1194_v25 = vpack.i.bf16 %v652_v13, %v651_v18  ;;  %v674_v26 = vrot.slane %v453_v14, 7 }
 0x120   : > { %v663_v27 = vrot.slane %v448_v15, 2  ;;  %v684_v28 = vrot.slane %v457_v21, 4  ;;  %v685_v29 = vrot.slane %v458_v22, 4  ;;  %v465_v31 = vpop.permute.xlu0 %464  ;;  %v1214_v52 = vpack.i.bf16 %v706_v43, %v705_v47 }
 0x121   : > { %1195 = vrot.lane.b32.xlu1 %v1194_v25, %s1415_s9  ;;  %v1204_v32 = vpack.i.bf16 %v674_v26, %v673_v23  ;;  %v696_v34 = vrot.slane %v462_v20, 1  ;;  %v697_v35 = vrot.slane %v463_v24, 1  ;;  %v467_v36 = vmul.f32 %v465_v31, %v1560_v10 }
 0x122   : > { %v470_v30 = vpop.permute.xlu1 %469  ;;  %v468_v37 = vmul.f32 %v465_v31, %v1562_v11  ;;  %v1199_v38 = vpack.i.bf16 %v663_v27, %v662_v33  ;;  %v1209_v42 = vpack.i.bf16 %v685_v29, %v684_v28  ;;  %v1234_v62 = vpack.i.bf16 %v488_v54, %v487_v60 }
 0x123   : > { %1205 = vrot.lane.b32.xlu0 %v1204_v32, %s1416_s22  ;;  %v716_v44 = vrot.slane %v467_v36, 3  ;;  %v1219_v46 = vpack.i.bf16 %v697_v35, %v696_v34  ;;  %v472_v48 = vmul.f32 %v470_v30, %v1560_v10  ;;  %v473_v49 = vmul.f32 %v470_v30, %v1562_v11 }
 0x124   : > { %v379_v41 = vpop.permute.xlu0 %378  ;;  %v717_v45 = vrot.slane %v468_v37, 3  ;;  %v1249_v5 = vpack.i.bf16 %v590_v61, %v589_v63  ;;  %v540_v15 = vrot.slane %v1562_v11, 3  ;;  %v539_v20 = vrot.slane %v1560_v10, 3 }
 0x125   : > { %1200 = vrot.lane.b32.xlu1 %v1199_v38, %s1417_s6  ;;  %v381_v55 = vmul.f32 %v379_v41, %v1560_v10  ;;  %v382_v56 = vmul.f32 %v379_v41, %v1562_v11  ;;  %v1229_v57 = vpack.i.bf16 %v473_v49, %v472_v48 }
 0x126   : > { %v369_v39 = vpop.permute.xlu1 %368  ;;  %v1224_v53 = vpack.i.bf16 %v717_v45, %v716_v44  ;;  %v1244_v28 = vpack.i.bf16 %v540_v15, %v539_v20 }
 0x127   : > { %1210 = vrot.lane.b32.xlu0 %v1209_v42, %s1418_s7  ;;  %v498_v0 = vrot.slane %v381_v55, 7  ;;  %v499_v1 = vrot.slane %v382_v56, 7  ;;  %v371_v9 = vmul.f32 %v369_v39, %v1560_v10  ;;  %v372_v12 = vmul.f32 %v369_v39, %v1562_v11 }
 0x128   : > { %v389_v51 = vpop.permute.xlu0 %388 }
 0x129   : > { %1220 = vrot.lane.b32.xlu1 %v1219_v46, %s1398_s26  ;;  %v391_v2 = vmul.f32 %v389_v51, %v1560_v10  ;;  %v392_v3 = vmul.f32 %v389_v51, %v1562_v11  ;;  %v1254_v14 = vpack.i.bf16 %v499_v1, %v498_v0  ;;  %v476_v21 = vrot.slane %v371_v9, 5 }
 0x12a   : > { %v395_v50 = vpop.permute.xlu1 %394  ;;  %v477_v22 = vrot.slane %v372_v12, 5 }
 0x12b   : > { %1215 = vrot.lane.b32.xlu0 %v1214_v52, %s1419_s11  ;;  %v509_v16 = vrot.slane %v391_v2, 4  ;;  %v510_v17 = vrot.slane %v392_v3, 4  ;;  %v397_v23 = vmul.f32 %v395_v50, %v1560_v10  ;;  %v398_v24 = vmul.f32 %v395_v50, %v1562_v11 }
 0x12c   : > { %v400_v59 = vpop.permute.xlu0 %399  ;;  %v1259_v35 = vpack.i.bf16 %v477_v22, %v476_v21 }
 0x12d   : > { %1225 = vrot.lane.b32.xlu1 %v1224_v53, %s1420_s21  ;;  %v402_v18 = vmul.f32 %v400_v59, %v1560_v10  ;;  %v403_v19 = vmul.f32 %v400_v59, %v1562_v11  ;;  %v1264_v31 = vpack.i.bf16 %v510_v17, %v509_v16  ;;  %v520_v32 = vrot.slane %v397_v23, 1 }
 0x12e   : > { %v410_v58 = vpop.permute.xlu1 %409  ;;  %v521_v33 = vrot.slane %v398_v24, 1 }
 0x12f   : > { %1230 = vrot.lane.b32.xlu0 %v1229_v57, %s1421_s28  ;;  %v412_v25 = vmul.f32 %v410_v58, %v1560_v10  ;;  %v413_v26 = vmul.f32 %v410_v58, %v1562_v11  ;;  %v530_v29 = vrot.slane %v402_v18, 6  ;;  %v531_v30 = vrot.slane %v403_v19, 6 }
 0x130   : > { %v415_v8 = vpop.permute.xlu0 %414  ;;  %v1269_v46 = vpack.i.bf16 %v521_v33, %v520_v32 }
 0x131   : > { %1235 = vrot.lane.b32.xlu1 %v1234_v62, %s1417_s6  ;;  %v559_v36 = vrot.slane %v412_v25, 5  ;;  %v560_v37 = vrot.slane %v413_v26, 5  ;;  %v417_v41 = vmul.f32 %v415_v8, %v1560_v10  ;;  %v418_v42 = vmul.f32 %v415_v8, %v1562_v11 }
 0x132   : > { %v405_v4 = vpop.permute.xlu1 %404  ;;  %v1274_v43 = vpack.i.bf16 %v531_v30, %v530_v29 }
 0x133   : > { %v407_v6 = vmul.f32 %v405_v4, %v1560_v10  ;;  %v408_v7 = vmul.f32 %v405_v4, %v1562_v11  ;;  %1250 = vrot.lane.b32.xlu0 %v1249_v5, %s1422_s29  ;;  %v1279_v50 = vpack.i.bf16 %v560_v37, %v559_v36  ;;  %v570_v51 = vrot.slane %v417_v41, 2 }
 0x134   : > { %v420_v27 = vpop.permute.xlu0 %419  ;;  %v571_v52 = vrot.slane %v418_v42, 2 }
 0x135   : > { %v1239_v13 = vpack.i.bf16 %v408_v7, %v407_v6  ;;  %v422_v38 = vmul.f32 %v420_v27, %v1560_v10  ;;  %v423_v39 = vmul.f32 %v420_v27, %v1562_v11 }
 0x136   : > { %v425_v34 = vpop.permute.xlu1 %424  ;;  %v1284_v63 = vpack.i.bf16 %v571_v52, %v570_v51 }
 0x137   : > { %1240 = vrot.lane.b32.xlu1 %v1239_v13, %s1421_s28  ;;  %1255 = vrot.lane.b32.xlu0 %v1254_v14, %s1416_s22  ;;  %v427_v45 = vmul.f32 %v425_v34, %v1560_v10  ;;  %v428_v47 = vmul.f32 %v425_v34, %v1562_v11  ;;  %v580_v48 = vrot.slane %v422_v38, 7  ;;  %v581_v49 = vrot.slane %v423_v39, 7  ;;  %s171_s28 = sand.u32 1, %s1363_s12  }
 0x138   : > { %v430_v44 = vpop.permute.xlu0 %429  ;;  %s1010_s29 = sshll.u32 %s171_s28, 5 }
 0x139   : > { %v432_v54 = vmul.f32 %v430_v44, %v1560_v10  ;;  %v433_v55 = vmul.f32 %v430_v44, %v1562_v11  ;;  %v600_v56 = vrot.slane %v427_v45, 1  ;;  %v601_v57 = vrot.slane %v428_v47, 1 }
 0x13a   : > { %v435_v53 = vpop.permute.xlu1 %434  ;;  %v1289_v60 = vpack.i.bf16 %v581_v49, %v580_v48  ;;  %v776_v49 = vld [vmem:[%s1735_s1] sm:$0xff] }
 0x13b   : > { %1245 = vrot.lane.b32.xlu1 %v1244_v28, %s1420_s21  ;;  %1265 = vrot.lane.b32.xlu0 %v1264_v31, %s1423_s8  ;;  %v437_v58 = vmul.f32 %v435_v53, %v1560_v10  ;;  %v438_v59 = vmul.f32 %v435_v53, %v1562_v11  ;;  %v611_v61 = vrot.slane %v432_v54, 6  ;;  %v612_v62 = vrot.slane %v433_v55, 6  ;;  %s173_s8 = scalar_lea.vmem [#allocation2], %s1010_s29 }
 0x13c   : > { %v1294_v2 = vpack.i.bf16 %v601_v57, %v600_v56  ;;  %v440_v5 = vpop.permute.xlu0 %439  ;;  %1058 = vmatprep.mubr.msk.f32.mxu0 %vm1739_vm4, %v776_v49 }
 0x13d   : > { %v622_v0 = vrot.slane %v437_v58, 3  ;;  %v623_v1 = vrot.slane %v438_v59, 3  ;;  %v1299_v3 = vpack.i.bf16 %v612_v62, %v611_v61  ;;  %v442_v15 = vmul.f32 %v440_v5, %v1560_v10 }
 0x13e   : > { %v443_v16 = vmul.f32 %v440_v5, %v1562_v11 }
 0x13f   : > { %1260 = vrot.lane.b32.xlu1 %v1259_v35, %s1415_s9  ;;  %1275 = vrot.lane.b32.xlu0 %v1274_v43, %s1419_s11  ;;  %v1304_v4 = vpack.i.bf16 %v623_v1, %v622_v0 }
 0x143   : > { %1270 = vrot.lane.b32.xlu1 %v1269_v46, %s1398_s26  ;;  %1280 = vrot.lane.b32.xlu0 %v1279_v50, %s1424_s30  ;;  %s1426_s26 = smov 93   ;;  %v778_v50 = vld [vmem:[%s1735_s1 + $0x10] sm:$0xff]  ;;  %s1020_s30 = sshll.u32 (%p1496_p5), %s1375_s15, 3 }
 0x144   : > { %1061 = vmatprep.mubr.msk.f32.mxu1 %vm1739_vm4, %v778_v50  ;;  %vm515_vm4 = vcmask 1014784  }
 0x147   : > { %1290 = vrot.lane.b32.xlu1 %v1289_v60, %s1425_s4  ;;  %1285 = vrot.lane.b32.xlu0 %v1284_v63, %s1394_s10  ;;  %s1428_s10 = smov 79   ;;  %s892_s4 = sadd.s32 (%p1496_p5), %s1371_s14, %s1020_s30 }
 0x148   : > { %s1021_s12 = sshll.u32 (%p1496_p5), %s892_s4, 3 }
 0x14b   : > { %1295 = vrot.lane.b32.xlu1 %v1294_v2, %s1426_s26  ;;  %1300 = vrot.lane.b32.xlu0 %v1299_v3, %s1427_s24 }
 0x14f   : > { %1305 = vrot.lane.b32.xlu1 %v1304_v4, %s1397_s25 }
 0x193   : > { %v1196_v6 = vpop.permute.xlu1 %1195 }
 0x194   : > { %v1198_v7 = vunpack.i.h.bf16 %v1196_v6  ;;  %v1197_v8 = vunpack.i.l.bf16 %v1196_v6 }
 0x195   : > { %v1206_v9 = vpop.permute.xlu0 %1205 }
 0x196   : > { %v657_v12 = vsel %vm482_vm9, %v1197_v8, %v1198_v7  ;;  %v1208_v13 = vunpack.i.h.bf16 %v1206_v9  ;;  %v1207_v14 = vunpack.i.l.bf16 %v1206_v9  ;;  %v733_v20 = vsel %vm630_vm10, %v443_v16, %v1198_v7 }
 0x197   : > { %v1201_v17 = vpop.permute.xlu1 %1200  ;;  %v732_v23 = vsel %vm630_vm10, %v442_v15, %v657_v12  ;;  %v362_v16 = vmul.f32 %v1530_v40, %v1560_v10 }
 0x198   : > { %v1203_v18 = vunpack.i.h.bf16 %v1201_v17  ;;  %v1202_v19 = vunpack.i.l.bf16 %v1201_v17  ;;  %v679_v21 = vsel %vm504_vm11, %v1207_v14, %v1208_v13 }
 0x199   : > { %v1211_v22 = vpop.permute.xlu0 %1210 }
 0x19a   : > { %v668_v24 = vsel %vm493_vm12, %v1202_v19, %v1203_v18  ;;  %v737_v25 = vsel %vm634_vm13, %v1203_v18, %v1208_v13  ;;  %v1213_v11 = vunpack.i.h.bf16 %v1211_v22  ;;  %v1212_v26 = vunpack.i.l.bf16 %v1211_v22 }
 0x19b   : > { %v736_v27 = vsel %vm634_vm13, %v668_v24, %v679_v21  ;;  %v1221_v28 = vpop.permute.xlu1 %1220  ;;  %v734_v29 = vsel %vm632_vm15, %v732_v23, %v668_v24  ;;  %v735_v30 = vsel %vm632_vm15, %v733_v20, %v1203_v18 }
 0x19c   : > { %v691_v31 = vsel %vm690_vm0, %v1212_v26, %v1213_v11  ;;  %v739_v32 = vsel %vm636_vm14, %v737_v25, %v1213_v11  ;;  %v1223_v33 = vunpack.i.h.bf16 %v1221_v28  ;;  %v1222_v34 = vunpack.i.l.bf16 %v1221_v28 }
 0x19d   : > { %v1216_v35 = vpop.permute.xlu0 %1215  ;;  %v1309_v36 = vpack.i.bf16 %v735_v30, %v734_v29  ;;  %v738_v37 = vsel %vm636_vm14, %v736_v27, %v691_v31  ;;  %vm554_vm0 = vcmask 891904  }
 0x19e   : > { %v702_v38 = vsel %vm339_vm6, %v1222_v34, %v1223_v33  ;;  %v1218_v39 = vunpack.i.h.bf16 %v1216_v35  ;;  %v1217_v41 = vunpack.i.l.bf16 %v1216_v35  ;;  %v741_v42 = vsel %vm638_vm1, %v739_v32, %v1223_v33 }
 0x19f   : > { %1310 = vrot.lane.b32.xlu0 %v1309_v36, %s1428_s10  ;;  %v1226_v43 = vpop.permute.xlu1 %1225  ;;  %v740_v44 = vsel %vm638_vm1, %v738_v37, %v702_v38 }
 0x1a0   : > { %v743_v45 = vsel %vm640_vm3, %v1223_v33, %v1218_v39  ;;  %v711_v46 = vsel %vm536_vm2, %v1217_v41, %v1218_v39  ;;  %v1228_v47 = vunpack.i.h.bf16 %v1226_v43  ;;  %v1227_v48 = vunpack.i.l.bf16 %v1226_v43 }
 0x1a1   : > { %v1231_v51 = vpop.permute.xlu0 %1230  ;;  %v1314_v52 = vpack.i.bf16 %v741_v42, %v740_v44  ;;  %v742_v53 = vsel %vm640_vm3, %v702_v38, %v711_v46 }
 0x1a2   : > { %v722_v54 = vsel %vm545_vm7, %v1227_v48, %v1228_v47  ;;  %v1233_v55 = vunpack.i.h.bf16 %v1231_v51  ;;  %v1232_v56 = vunpack.i.l.bf16 %v1231_v51  ;;  %v745_v57 = vsel %vm1740_vm8, %v743_v45, %v1228_v47 }
 0x1a3   : > { %1315 = vrot.lane.b32.xlu1 %v1314_v52, %s1428_s10  ;;  %v744_v58 = vsel %vm1740_vm8, %v742_v53, %v722_v54  ;;  %v1236_v60 = vpop.permute.xlu1 %1235  ;;  %vm565_vm8 = vcmask 883712  }
 0x1a4   : > { %v731_v59 = vsel %vm554_vm0, %v1232_v56, %v1233_v55  ;;  %v1319_v61 = vpack.i.bf16 %v745_v57, %v744_v58  ;;  %v1238_v6 = vunpack.i.h.bf16 %v1236_v60  ;;  %v1237_v7 = vunpack.i.l.bf16 %v1236_v60 }
 0x1a5   : > { %v1324_v62 = vpack.i.bf16 %v1233_v55, %v731_v59  ;;  %v1657_v63 = vpop.permute.xlu0 %1250 }
 0x1a6   : > { %1320 = vrot.lane.b32.xlu0 %v1319_v61, %s1428_s10  ;;  %v494_v21 = vsel %vm493_vm12, %v1237_v7, %v1238_v6  ;;  %v1253_v49 = vunpack.i.h.bf16 %v1657_v63  ;;  %v1252_v59 = vunpack.i.l.bf16 %v1657_v63  ;;  %vm595_vm12 = vcmask 769024  }
 0x1a7   : > { %1325 = vrot.lane.b32.xlu1 %v1324_v62, %s1428_s10  ;;  %s894_s10 = scalar_lea.vmem (%p1496_p5), %s1737_s3, %s1021_s12 }
 0x1a8   : > { %v596_v6 = vsel %vm595_vm12, %v1252_v59, %v1253_v49 }
 0x1a9   : > { %v1241_v0 = vpop.permute.xlu1 %1240  ;;  %v1256_v1 = vpop.permute.xlu0 %1255 }
 0x1aa   : > { %v1258_v4 = vunpack.i.h.bf16 %v1256_v1  ;;  %v1257_v5 = vunpack.i.l.bf16 %v1256_v1  ;;  %v1243_v22 = vunpack.i.h.bf16 %v1241_v0  ;;  %v1242_v25 = vunpack.i.l.bf16 %v1241_v0 }
 0x1ac   : > { %v505_v17 = vsel %vm504_vm11, %v1257_v5, %v1258_v4  ;;  %v555_v47 = vsel %vm554_vm0, %v1242_v25, %v1243_v22  ;;  %vm1742_vm11 = vcmask 1044480  }
 0x1ad   : > { %v1246_v2 = vpop.permute.xlu1 %1245  ;;  %v1266_v3 = vpop.permute.xlu0 %1265  ;;  %v635_v40 = vsel %vm634_vm13, %v494_v21, %v505_v17 }
 0x1ae   : > { %v1268_v8 = vunpack.i.h.bf16 %v1266_v3  ;;  %v1267_v9 = vunpack.i.l.bf16 %v1266_v3  ;;  %v1248_v10 = vunpack.i.h.bf16 %v1246_v2  ;;  %v1247_v31 = vunpack.i.l.bf16 %v1246_v2 }
 0x1b0   : > { %v516_v23 = vsel %vm515_vm4, %v1267_v9, %v1268_v8  ;;  %vm586_vm4 = vcmask 777216   ;;  %v546_v48 = vsel %vm545_vm7, %v1247_v31, %v1248_v10 }
 0x1b1   : > { %v1261_v12 = vpop.permute.xlu1 %1260  ;;  %v1276_v15 = vpop.permute.xlu0 %1275  ;;  %v637_v32 = vsel %vm636_vm14, %v635_v40, %v516_v23 }
 0x1b2   : > { %v1263_v13 = vunpack.i.h.bf16 %v1261_v12  ;;  %v1262_v14 = vunpack.i.l.bf16 %v1261_v12  ;;  %v1278_v19 = vunpack.i.h.bf16 %v1276_v15  ;;  %v1277_v20 = vunpack.i.l.bf16 %v1276_v15 }
 0x1b4   : > { %v483_v18 = vsel %vm482_vm9, %v1262_v14, %v1263_v13  ;;  %v537_v33 = vsel %vm536_vm2, %v1277_v20, %v1278_v19  ;;  %vm617_vm9 = vcmask 752640   ;;  %vm1745_vm2 = vcmask 613376  }
 0x1b5   : > { %v1271_v24 = vpop.permute.xlu1 %1270  ;;  %v631_v11 = vsel %vm630_vm10, %v362_v16, %v483_v18  ;;  %v1281_v28 = vpop.permute.xlu0 %1280 }
 0x1b6   : > { %v1273_v26 = vunpack.i.h.bf16 %v1271_v24  ;;  %v1272_v27 = vunpack.i.l.bf16 %v1271_v24  ;;  %v1283_v29 = vunpack.i.h.bf16 %v1281_v28  ;;  %v1282_v30 = vunpack.i.l.bf16 %v1281_v28 }
 0x1b7   : > { %v633_v37 = vsel %vm632_vm15, %v631_v11, %v494_v21 }
 0x1b8   : > { %v526_v34 = vsel %vm339_vm6, %v1272_v27, %v1273_v26  ;;  %v566_v39 = vsel %vm565_vm8, %v1282_v30, %v1283_v29  ;;  %vm606_vm6 = vcmask 760832   ;;  %v777_v29 = vld [vmem:[%s1735_s1 + $0x8] sm:$0xff]  ;;  %v779_v30 = vld [vmem:[%s1735_s1 + $0x18] sm:$0x3f] }
 0x1b9   : > { %v641_v35 = vsel %vm640_vm3, %v526_v34, %v537_v33  ;;  %v1291_v36 = vpop.permute.xlu1 %1290  ;;  %v639_v38 = vsel %vm638_vm1, %v637_v32, %v526_v34  ;;  %v1286_v43 = vpop.permute.xlu0 %1285  ;;  %v644_v50 = vsel %vm630_vm10, %v555_v47, %v566_v39 }
 0x1ba   : > { %v1293_v41 = vunpack.i.h.bf16 %v1291_v36  ;;  %v1292_v42 = vunpack.i.l.bf16 %v1291_v36  ;;  %v1064_v44 = vpack.c.bf16 %v639_v38, %v633_v37  ;;  %v1288_v45 = vunpack.i.h.bf16 %v1286_v43 }
 0x1bb   : > { %v1287_v46 = vunpack.i.l.bf16 %v1286_v43  ;;  %v643_v53 = vsel %vm1742_vm11, %v641_v35, %v546_v48 }
 0x1bc   : > { %1065 = vmatprep.subr.bf16.mxu0 %v1064_v44  ;;  %1086 = vmatprep.subr.bf16.mxu1 %v1064_v44  ;;  %v587_v54 = vsel %vm586_vm4, %v1292_v42, %v1293_v41 }
 0x1bd   : > { %v576_v51 = vsel %vm337_vm5, %v1287_v46, %v1288_v45  ;;  %v1296_v52 = vpop.permute.xlu1 %1295  ;;  %1067 = vmatpush3.bf16.msra.mxu0 %v1064_v44  ;;  %1091 = vmatpush3.bf16.msra.mxu1 %v1064_v44  ;;  %v1301_v57 = vpop.permute.xlu0 %1300  ;;  %vm1743_vm5 = vcmask 654336  }
 0x1be   : > { %v1298_v55 = vunpack.i.h.bf16 %v1296_v52  ;;  %v1297_v56 = vunpack.i.l.bf16 %v1296_v52  ;;  %v645_v58 = vsel %vm632_vm15, %v644_v50, %v576_v51  ;;  %v1303_v60 = vunpack.i.h.bf16 %v1301_v57 }
 0x1bf   : > { %v1302_v61 = vunpack.i.l.bf16 %v1301_v57  ;;  %v1068_v62 = vpack.c.bf16 %v645_v58, %v643_v53  ;;  %v646_v0 = vsel %vm634_vm13, %v576_v51, %v587_v54  ;;  %vm1744_vm13 = vmmov %vm1742_vm11  ;;  %vm768_vm15 = vcmask 646144  }
 0x1c0   : > { %v607_v1 = vsel %vm606_vm6, %v1297_v56, %v1298_v55  ;;  %v647_v8 = vsel %vm636_vm14, %v646_v0, %v596_v6  ;;  %vm1429_vm14 = vmmov 1  }
 0x1c1   : > { %v618_v2 = vsel %vm617_vm9, %v1302_v61, %v1303_v60  ;;  %1069 = vmatprep.subr.bf16.mxu0 %v1068_v62  ;;  %1087 = vmatprep.subr.bf16.mxu1 %v1068_v62  ;;  %v1306_v3 = vpop.permute.xlu1 %1305  ;;  %v648_v9 = vsel %vm638_vm1, %v647_v8, %v607_v1  ;;  %vm1081_vm1 = vmpackc.low %vm630_vm10, %vm1429_vm14 }
 0x1c2   : > { %v1308_v4 = vunpack.i.h.bf16 %v1306_v3  ;;  %v1307_v5 = vunpack.i.l.bf16 %v1306_v3  ;;  %1071 = vmatpush3.bf16.msra.mxu0 %v1068_v62  ;;  %1092 = vmatpush3.bf16.msra.mxu1 %v1068_v62  ;;  %v649_v63 = vsel %vm640_vm3, %v607_v1, %v618_v2  ;;  %vm1746_vm3 = vmmov %vm1745_vm2 }
 0x1c4   : > { %v628_v7 = vsel %vm1743_vm5, %v1307_v5, %v1308_v4 }
 0x1c5   : > { %v650_v12 = vsel %vm1744_vm13, %v649_v63, %v628_v7 }
 0x1c6   : > { %v1072_v13 = vpack.c.bf16 %v650_v12, %v648_v9 }
 0x1c8   : > { %1073 = vmatprep.subr.bf16.mxu0 %v1072_v13  ;;  %1088 = vmatprep.subr.bf16.mxu1 %v1072_v13 }
 0x1c9   : > { %1075 = vmatpush3.bf16.msra.mxu0 %v1072_v13  ;;  %1093 = vmatpush3.bf16.msra.mxu1 %v1072_v13 }
 0x211   : > { %v1311_v14 = vpop.permute.xlu0 %1310 }
 0x212   : > { %v1313_v15 = vunpack.i.h.bf16 %v1311_v14  ;;  %v1312_v16 = vunpack.i.l.bf16 %v1311_v14 }
 0x214   : > { %v769_v20 = vsel %vm768_vm15, %v1312_v16, %v1313_v15 }
 0x215   : > { %v1316_v17 = vpop.permute.xlu1 %1315 }
 0x216   : > { %v1318_v18 = vunpack.i.h.bf16 %v1316_v17  ;;  %v1317_v19 = vunpack.i.l.bf16 %v1316_v17 }
 0x218   : > { %v770_v21 = vsel %vm768_vm15, %v1317_v19, %v1318_v18  ;;  %v1321_v22 = vpop.permute.xlu0 %1320 }
 0x219   : > { %v1076_v23 = vpack.c.bf16 %v770_v21, %v769_v20  ;;  %v1323_v24 = vunpack.i.h.bf16 %v1321_v22  ;;  %v1322_v25 = vunpack.i.l.bf16 %v1321_v22  ;;  %v1326_v11 = vpop.permute.xlu1 %1325 }
 0x21a   : > { %v1328_v26 = vunpack.i.h.bf16 %v1326_v11  ;;  %v1327_v27 = vunpack.i.l.bf16 %v1326_v11 }
 0x21b   : > { %v771_v28 = vsel %vm768_vm15, %v1322_v25, %v1323_v24  ;;  %1077 = vmatprep.subr.bf16.mxu0 %v1076_v23  ;;  %1089 = vmatprep.subr.bf16.mxu1 %v1076_v23 }
 0x21c   : > { %v772_v40 = vsel %vm768_vm15, %v1327_v27, %v1328_v26  ;;  %1079 = vmatpush3.bf16.msra.mxu0 %v1076_v23  ;;  %1094 = vmatpush3.bf16.msra.mxu1 %v1076_v23 }
 0x21d   : > { %v1080_v10 = vpack.c.bf16 %v772_v40, %v771_v28 }
 0x21f   : > { %1082 = vmatprep.subr.msk.bf16.mxu0 %vm1081_vm1, %v1080_v10  ;;  %1090 = vmatprep.subr.msk.bf16.mxu1 %vm1081_vm1, %v1080_v10 }
 0x220   : > { %1085 = vmatpush3.bf16.msk.msra.mxu0 %vm1081_vm1, %v1080_v10  ;;  %1095 = vmatpush3.bf16.msk.msra.mxu1 %vm1081_vm1, %v1080_v10 }
 0x223   : > { %1059 = vmatmul.mubr.msk.f32.vlgmr.msra.gmra.mrb[0].mxu0 %vm1745_vm2, %v777_v29  ;;  %1062 = vmatmul.mubr.msk.f32.vlgmr.msra.gmra.mrb[0].mxu1 %vm1746_vm3, %v779_v30 }
 0x2f2   : > { %890 = sbr.rel (!%p1496_p5) target bundleno = 769 (0x301), region = 36 }
 0x2f6   : > { %v1060_v31 = vpop.f32.mrb[0].mxu0  ;;  %v1063_v32 = vpop.f32.mrb[0].mxu1 }
 0x2f7   : > { %881 = vst [vmem:[%s173_s8 + $0x8] sm:$0xff] %v1060_v31  ;;  %883 = vst [vmem:[%s173_s8 + $0x18] sm:$0x3f] %v1063_v32  ;;  %v861_v33 = vpop.f32.mrb[1].mxu0  ;;  %v871_v34 = vpop.f32.mrb[1].mxu1 }
 0x2f8   : > { %880 = vst [vmem:[%s173_s8] sm:$0xff] %v861_v33  ;;  %882 = vst [vmem:[%s173_s8 + $0x10] sm:$0xff] %v871_v34 }
 0x2fe   : > { %v930_v36 = vld [vmem:[%s173_s8 + $0x8] sm:$0xff]  ;;  %v934_v38 = vld [vmem:[%s173_s8 + $0x18] sm:$0xff] }
 0x2ff   : > { %v928_v35 = vld [vmem:[%s173_s8] sm:$0xff]  ;;  %v932_v37 = vld [vmem:[%s173_s8 + $0x10] sm:$0xff]  ;;  %931 = vst [vmem:[%s894_s10 + $0x10] sm:$0xff] %v930_v36  ;;  %935 = vst [vmem:[%s894_s10 + $0x30] sm:$0xff] %v934_v38 }
 0x300   : > { %929 = vst [vmem:[%s894_s10] sm:$0xff] %v928_v35  ;;  %933 = vst [vmem:[%s894_s10 + $0x20] sm:$0xff] %v932_v37 }
 0x301 PF: > { %s13_s18 = sadd.s32 1, %s1387_s18   ;;  %s1747_s12 = smov %s1367_s13 }
 0x302   : > { %p10_p10 = scmp.ge.s32.totalorder %s13_s18, 6   ;;  %s1748_s13 = smov %s1507_s27 }
 0x303   : > { %s1749_s14 = smov %s1379_s16  ;;  %s1750_s15 = smov %s1383_s17 }
 0x304   : > { %s1751_s16 = smov %s1754_s19  ;;  %s1752_s17 = smov %s1758_s20 }
 0x305   :  { %12 = sbr.rel (!%p10_p10) target bundleno = 4 (0x4), region = 101 }

</bundles_post_ra>
